<compile_context>
chip_gen: v7x
topology: tpu7x:2x2x1
jax: 0.10.0
libtpu: 0.0.40
codegen_flags: <defaults>
</compile_context>

<pallas_src>
import functools

import jax
import jax.numpy as jnp
from jax import lax
from jax.experimental import pallas as pl
from jax.experimental.pallas import tpu as pltpu


# --------------------------------- tiling helper -------------------------------------

def _fit_tile(dim, target, align):
    """Largest multiple of `align` dividing `dim` that is <= target (or the full dim)."""
    if dim <= target:
        return dim
    t = (target // align) * align
    while t >= align:
        if dim % t == 0:
            return t
        t -= align
    return dim


# ----------------------------- fused QKV projection kernel ---------------------------

def _qkv_kernel(x_ref, wq_ref, wk_ref, wv_ref, q_ref, k_ref, v_ref,
                accq, acck, accv):
    @pl.when(pl.program_id(1) == 0)
    def _init():
        accq[...] = jnp.zeros_like(accq)
        acck[...] = jnp.zeros_like(acck)
        accv[...] = jnp.zeros_like(accv)

    x = x_ref[...]                                      # [tm, tk]
    dims = (((1,), (1,)), ((), ()))                     # contract K of x with K of w (w is [N, K])
    accq[...] += lax.dot_general(x, wq_ref[...], dims, preferred_element_type=jnp.float32)
    acck[...] += lax.dot_general(x, wk_ref[...], dims, preferred_element_type=jnp.float32)
    accv[...] += lax.dot_general(x, wv_ref[...], dims, preferred_element_type=jnp.float32)

    @pl.when(pl.program_id(1) == pl.num_programs(1) - 1)
    def _fin():
        q_ref[...] = accq[...].astype(q_ref.dtype)
        k_ref[...] = acck[...].astype(k_ref.dtype)
        v_ref[...] = accv[...].astype(v_ref.dtype)


def qkv_proj(x, wq, wk, wv, *, tm_target=256, tk_target=512):
    """x: [M, K]; wq/wk/wv: [Nq|Nkv, K] (nn.Linear, bias=False). Returns (q, k, v)."""
    M, K = x.shape
    Nq, Nk, Nv = wq.shape[0], wk.shape[0], wv.shape[0]
    tm = _fit_tile(M, tm_target, 8)
    tk = _fit_tile(K, tk_target, 128)
    grid = (M // tm, K // tk)
    return pl.pallas_call(
        _qkv_kernel,
        out_shape=(jax.ShapeDtypeStruct((M, Nq), x.dtype),
                   jax.ShapeDtypeStruct((M, Nk), x.dtype),
                   jax.ShapeDtypeStruct((M, Nv), x.dtype)),
        grid=grid,
        in_specs=[
            pl.BlockSpec((tm, tk), lambda i, kk: (i, kk)),
            pl.BlockSpec((Nq, tk), lambda i, kk: (0, kk)),
            pl.BlockSpec((Nk, tk), lambda i, kk: (0, kk)),
            pl.BlockSpec((Nv, tk), lambda i, kk: (0, kk)),
        ],
        out_specs=(pl.BlockSpec((tm, Nq), lambda i, kk: (i, 0)),
                   pl.BlockSpec((tm, Nk), lambda i, kk: (i, 0)),
                   pl.BlockSpec((tm, Nv), lambda i, kk: (i, 0))),
        scratch_shapes=[pltpu.VMEM((tm, Nq), jnp.float32),
                        pltpu.VMEM((tm, Nk), jnp.float32),
                        pltpu.VMEM((tm, Nv), jnp.float32)],
        compiler_params=pltpu.CompilerParams(
            dimension_semantics=("parallel", "arbitrary")),
    )(x, wq, wk, wv)


# --------------------------- generic tiled linear (o_proj) ---------------------------

def _linear_kernel(x_ref, w_ref, o_ref, acc_ref):
    @pl.when(pl.program_id(2) == 0)
    def _init():
        acc_ref[...] = jnp.zeros_like(acc_ref)

    acc_ref[...] += lax.dot_general(
        x_ref[...], w_ref[...], (((1,), (1,)), ((), ())),   # w is [N, K]: contract K dims
        preferred_element_type=jnp.float32)

    @pl.when(pl.program_id(2) == pl.num_programs(2) - 1)
    def _fin():
        o_ref[...] = acc_ref[...].astype(o_ref.dtype)


def linear(x, w, *, tm_target=256, tn_target=256, tk_target=512):
    """x: [M, K]; w: [N, K] (nn.Linear convention, no bias). Returns [M, N]."""
    M, K = x.shape
    N = w.shape[0]
    tm = _fit_tile(M, tm_target, 8)
    tn = _fit_tile(N, tn_target, 128)
    tk = _fit_tile(K, tk_target, 128)
    grid = (M // tm, N // tn, K // tk)
    return pl.pallas_call(
        _linear_kernel,
        out_shape=jax.ShapeDtypeStruct((M, N), x.dtype),
        grid=grid,
        in_specs=[
            pl.BlockSpec((tm, tk), lambda i, j, kk: (i, kk)),
            pl.BlockSpec((tn, tk), lambda i, j, kk: (j, kk)),
        ],
        out_specs=pl.BlockSpec((tm, tn), lambda i, j, kk: (i, j)),
        scratch_shapes=[pltpu.VMEM((tm, tn), jnp.float32)],
        compiler_params=pltpu.CompilerParams(
            dimension_semantics=("parallel", "parallel", "arbitrary")),
    )(x, w)


# -------------------------- flash attention (RoPE + GQA fused) -----------------------

def _flash_kernel(q_ref, k_ref, v_ref, cosq_ref, sinq_ref, cosk_ref, sink_ref,
                  o_ref, m_scr, l_scr, acc_scr, *, scaling, tq, tkv, n_rep, head_dim):
    qi = pl.program_id(2)
    ki = pl.program_id(3)
    half = head_dim // 2

    @pl.when(ki == 0)
    def _init():
        m_scr[...] = jnp.full(m_scr.shape, -1e30, dtype=m_scr.dtype)
        l_scr[...] = jnp.zeros_like(l_scr)
        acc_scr[...] = jnp.zeros_like(acc_scr)

    # Causal: kv tiles strictly above the diagonal contribute nothing -> skip compute.
    @pl.when(ki <= qi)
    def _compute():
        # RoPE: rotate_half(x)*sin == roll(x, D/2, lanes) * sin_signed.
        # Softmax scale folded into q (S x D mul instead of S x S).
        q3 = q_ref[0]                                                   # [n_rep, tq, D]
        q3 = (q3 * cosq_ref[...] +
              pltpu.roll(q3, half, axis=2) * sinq_ref[...]) * scaling
        q2 = q3.reshape(n_rep * tq, head_dim)                           # layout no-op

        kt = k_ref[0, 0]                                                # [tkv, D]
        kt = kt * cosk_ref[...] + pltpu.roll(kt, half, axis=1) * sink_ref[...]

        s = lax.dot_general(q2, kt, (((1,), (1,)), ((), ())),
                            preferred_element_type=jnp.float32)         # [n_rep*tq, tkv]

        # In-kernel causal mask (merged row m = r*tq + q_local).
        row = lax.broadcasted_iota(jnp.int32, s.shape, 0)
        col = lax.broadcasted_iota(jnp.int32, s.shape, 1)
        qpos = qi * tq + (row % tq)
        kpos = ki * tkv + col
        s = jnp.where(kpos <= qpos, s, -1e30)

        m_prev = m_scr[...]
        m_new = jnp.maximum(m_prev, jnp.max(s, axis=-1, keepdims=True))
        alpha = jnp.exp(m_prev - m_new)
        p = jnp.exp(s - m_new)
        l_scr[...] = alpha * l_scr[...] + jnp.sum(p, axis=-1, keepdims=True)
        acc_scr[...] = alpha * acc_scr[...] + jnp.dot(
            p.astype(v_ref.dtype), v_ref[0, 0], preferred_element_type=jnp.float32)
        m_scr[...] = m_new

    @pl.when(ki == pl.num_programs(3) - 1)
    def _finalize():
        inv_l = pl.reciprocal(l_scr[...], approx=True)
        o_ref[0] = (acc_scr[...] * inv_l).reshape(
            n_rep, tq, head_dim).astype(o_ref.dtype)


def flash_attention(q, k, v, cos, sin_signed, scaling, *, tile_target=128):
    """q: [B,NH,S,D]; k,v: [B,NKV,S,D]; cos,sin_signed: [S,D]. Returns [B,NH,S,D]."""
    B, NH, S, D = q.shape
    NKV = k.shape[1]
    n_rep = NH // NKV
    tq = tkv = _fit_tile(S, tile_target, 8)
    nq, nk = S // tq, S // tkv

    kernel = functools.partial(_flash_kernel, scaling=scaling, tq=tq, tkv=tkv,
                               n_rep=n_rep, head_dim=D)
    return pl.pallas_call(
        kernel,
        out_shape=jax.ShapeDtypeStruct((B, NH, S, D), q.dtype),
        grid=(B, NKV, nq, nk),
        in_specs=[
            # all n_rep query heads of KV group g in one step (repeat_kv via BlockSpec)
            pl.BlockSpec((1, n_rep, tq, D), lambda b, g, qi, ki: (b, g, qi, 0)),
            pl.BlockSpec((1, 1, tkv, D), lambda b, g, qi, ki: (b, g, ki, 0)),
            pl.BlockSpec((1, 1, tkv, D), lambda b, g, qi, ki: (b, g, ki, 0)),
            pl.BlockSpec((tq, D), lambda b, g, qi, ki: (qi, 0)),   # cos for q rows
            pl.BlockSpec((tq, D), lambda b, g, qi, ki: (qi, 0)),   # signed sin, q rows
            pl.BlockSpec((tkv, D), lambda b, g, qi, ki: (ki, 0)),  # cos for k rows
            pl.BlockSpec((tkv, D), lambda b, g, qi, ki: (ki, 0)),  # signed sin, k rows
        ],
        out_specs=pl.BlockSpec((1, n_rep, tq, D), lambda b, g, qi, ki: (b, g, qi, 0)),
        scratch_shapes=[pltpu.VMEM((n_rep * tq, 1), jnp.float32),   # running max
                        pltpu.VMEM((n_rep * tq, 1), jnp.float32),   # running denom
                        pltpu.VMEM((n_rep * tq, D), jnp.float32)],  # output accumulator
        compiler_params=pltpu.CompilerParams(
            dimension_semantics=("parallel", "parallel", "parallel", "arbitrary")),
    )(q, k, v, cos, sin_signed, cos, sin_signed)


# ----------------- optional attention-probabilities path (debug only) ----------------

def _attn_probs_kernel(q_ref, k_ref, cos_ref, sin_ref, w_ref, *, scaling, n_rep):
    S, D = k_ref.shape[-2], k_ref.shape[-1]
    half = D // 2
    cos = cos_ref[...]
    sin = sin_ref[...]
    q3 = q_ref[0]                                                      # [n_rep, S, D]
    q3 = (q3 * cos + pltpu.roll(q3, half, axis=2) * sin) * scaling
    q2 = q3.reshape(n_rep * S, D)
    kt = k_ref[0, 0]
    kt = kt * cos + pltpu.roll(kt, half, axis=1) * sin
    s = lax.dot_general(q2, kt, (((1,), (1,)), ((), ())),
                        preferred_element_type=jnp.float32)            # [n_rep*S, S]
    row = lax.broadcasted_iota(jnp.int32, s.shape, 0) % S
    col = lax.broadcasted_iota(jnp.int32, s.shape, 1)
    s = jnp.where(col <= row, s, -1e30)
    s = s - jnp.max(s, axis=-1, keepdims=True)
    p = jnp.exp(s)
    p = p / jnp.sum(p, axis=-1, keepdims=True)
    w_ref[0] = p.reshape(n_rep, S, S).astype(w_ref.dtype)


def attention_probs(q, k, cos, sin_signed, scaling):
    B, NH, S, D = q.shape
    NKV = k.shape[1]
    n_rep = NH // NKV
    kernel = functools.partial(_attn_probs_kernel, scaling=scaling, n_rep=n_rep)
    return pl.pallas_call(
        kernel,
        out_shape=jax.ShapeDtypeStruct((B, NH, S, S), jnp.float32),
        grid=(B, NKV),
        in_specs=[
            pl.BlockSpec((1, n_rep, S, D), lambda b, g: (b, g, 0, 0)),
            pl.BlockSpec((1, 1, S, D), lambda b, g: (b, g, 0, 0)),
            pl.BlockSpec((S, D), lambda b, g: (0, 0)),
            pl.BlockSpec((S, D), lambda b, g: (0, 0)),
        ],
        out_specs=pl.BlockSpec((1, n_rep, S, S), lambda b, g: (b, g, 0, 0)),
        compiler_params=pltpu.CompilerParams(
            dimension_semantics=("parallel", "parallel")),
    )(q, k, cos, sin_signed)


# ------------------------------ module-level forward ---------------------------------

def granitemoe_attention_forward(hidden_states, params, cos, sin,
                                 num_heads, num_kv_heads, scaling,
                                 output_attentions=False):
    B, S, H = hidden_states.shape
    D = H // num_heads
    dtype = hidden_states.dtype

    x2d = hidden_states.reshape(B * S, H)
    q2d, k2d, v2d = qkv_proj(x2d, params["q_proj"], params["k_proj"], params["v_proj"])

    # Head-major layout for the attention kernel; layout change left to XLA.
    q = q2d.reshape(B, S, num_heads, D).transpose(0, 2, 1, 3)       # [B, NH, S, D]
    k = k2d.reshape(B, S, num_kv_heads, D).transpose(0, 2, 1, 3)    # [B, NKV, S, D]
    v = v2d.reshape(B, S, num_kv_heads, D).transpose(0, 2, 1, 3)

    # rotate_half folded into a signed-sin table (constant per call).
    half = D // 2
    sign = jnp.concatenate([-jnp.ones((half,), cos.dtype), jnp.ones((half,), cos.dtype)])
    cos_t = cos.astype(dtype)
    sin_t = (sin * sign).astype(dtype)

    ctx = flash_attention(q, k, v, cos_t, sin_t, scaling)           # [B, NH, S, D]
    ctx = ctx.transpose(0, 2, 1, 3).reshape(B * S, H)
    out = linear(ctx, params["o_proj"]).reshape(B, S, H)

    weights = None
    if output_attentions:
        # Debug-only path; the hot path never materializes the S x S weights.
        weights = attention_probs(q, k, cos_t, sin_t, scaling)

    # TODO(synk): arbitrary additive attention_mask (padding), attention_bias,
    # attention_dropout and the KV-cache path are not implemented (defaults:
    # causal-only / False / 0.0 / None).
    return out, weights


# ------------------------------ pure-JAX reference -----------------------------------

def _rotate_half_ref(x):
    x1 = x[..., : x.shape[-1] // 2]
    x2 = x[..., x.shape[-1] // 2:]
    return jnp.concatenate([-x2, x1], axis=-1)


def reference_forward(hidden_states, params, cos, sin, num_heads, num_kv_heads, scaling):
    B, S, H = hidden_states.shape
    D = H // num_heads
    n_rep = num_heads // num_kv_heads

    q = hidden_states @ params["q_proj"].T
    k = hidden_states @ params["k_proj"].T
    v = hidden_states @ params["v_proj"].T
    q = q.reshape(B, S, num_heads, D).transpose(0, 2, 1, 3)
    k = k.reshape(B, S, num_kv_heads, D).transpose(0, 2, 1, 3)
    v = v.reshape(B, S, num_kv_heads, D).transpose(0, 2, 1, 3)

    c = cos[None, None]
    s = sin[None, None]
    q = q * c + _rotate_half_ref(q) * s
    k = k * c + _rotate_half_ref(k) * s

    k = jnp.repeat(k, n_rep, axis=1)
    v = jnp.repeat(v, n_rep, axis=1)

    scores = jnp.einsum("bhqd,bhkd->bhqk", q, k) * scaling
    causal = (jnp.arange(S)[None, :] <= jnp.arange(S)[:, None])[None, None]
    scores = jnp.where(causal, scores, -jnp.inf)
    w = jax.nn.softmax(scores.astype(jnp.float32), axis=-1)
    o = jnp.einsum("bhqk,bhkd->bhqd", w, v)
    o = o.transpose(0, 2, 1, 3).reshape(B, S, H)
    o = o @ params["o_proj"].T
    return o, w


# --------------------------------------- main ----------------------------------------

if __name__ == "__main__":
    # Small GraniteMoe-like config
    B, S = 2, 8
    hidden_size = 64
    num_heads = 4
    num_kv_heads = 2
    head_dim = hidden_size // num_heads          # 16
    attention_multiplier = 0.015625              # config.attention_multiplier (scaling)
    rope_theta = 10000.0

    key = jax.random.PRNGKey(0)
    kx, kq, kk, kv, ko = jax.random.split(key, 5)

    hidden_states = jax.random.normal(kx, (B, S, hidden_size), dtype=jnp.float32)
    params = {
        "q_proj": 0.02 * jax.random.normal(kq, (num_heads * head_dim, hidden_size), jnp.float32),
        "k_proj": 0.02 * jax.random.normal(kk, (num_kv_heads * head_dim, hidden_size), jnp.float32),
        "v_proj": 0.02 * jax.random.normal(kv, (num_kv_heads * head_dim, hidden_size), jnp.float32),
        "o_proj": 0.02 * jax.random.normal(ko, (hidden_size, hidden_size), jnp.float32),
    }

    # Rotary embeddings (GraniteMoeRotaryEmbedding equivalent), cos/sin: [S, head_dim]
    inv_freq = 1.0 / (rope_theta ** (jnp.arange(0, head_dim, 2, dtype=jnp.float32) / head_dim))
    pos = jnp.arange(S, dtype=jnp.float32)
    freqs = pos[:, None] * inv_freq[None, :]
    emb = jnp.concatenate([freqs, freqs], axis=-1)
    cos, sin = jnp.cos(emb), jnp.sin(emb)

    out, weights = granitemoe_attention_forward(
        hidden_states, params, cos, sin,
        num_heads, num_kv_heads, attention_multiplier,
        output_attentions=True)
    out = jax.block_until_ready(out)
    weights = jax.block_until_ready(weights)

    ref_out, ref_w = reference_forward(
        hidden_states, params, cos, sin,
        num_heads, num_kv_heads, attention_multiplier)

    assert out.shape == (B, S, hidden_size)
    assert weights.shape == (B, num_heads, S, S)
    assert jnp.allclose(out, ref_out, atol=2e-3, rtol=2e-3)
    assert jnp.allclose(weights, ref_w, atol=1e-3, rtol=1e-3)

    print("KERNEL_OK")
</pallas_src>

<mosaic_0001>
module attributes {stable_mosaic.version = 11 : i64} {
  func.func @_qkv_kernel(%arg0: i32, %arg1: i32, %arg2: memref<16x64xf32, #tpu.memory_space<vmem>>, %arg3: memref<64x64xf32, #tpu.memory_space<vmem>>, %arg4: memref<32x64xf32, #tpu.memory_space<vmem>>, %arg5: memref<32x64xf32, #tpu.memory_space<vmem>>, %arg6: memref<16x64xf32, #tpu.memory_space<vmem>>, %arg7: memref<16x32xf32, #tpu.memory_space<vmem>>, %arg8: memref<16x32xf32, #tpu.memory_space<vmem>>, %arg9: memref<16x64xf32, #tpu.memory_space<vmem>>, %arg10: memref<16x32xf32, #tpu.memory_space<vmem>>, %arg11: memref<16x32xf32, #tpu.memory_space<vmem>>) attributes {dimension_semantics = [#tpu.dimension_semantics<parallel>, #tpu.dimension_semantics<arbitrary>], iteration_bounds = array<i64: 1, 1>, scalar_prefetch = 0 : i64, scratch_operands = 3 : i64, tpu.core_type = #tpu.core_type<tc>, window_params = [{transform_indices = @transform_0, window_bounds = array<i64: 16, 64>}, {transform_indices = @transform_1, window_bounds = array<i64: 64, 64>}, {transform_indices = @transform_2, window_bounds = array<i64: 32, 64>}, {transform_indices = @transform_3, window_bounds = array<i64: 32, 64>}, {transform_indices = @transform_4, window_bounds = array<i64: 16, 64>}, {transform_indices = @transform_5, window_bounds = array<i64: 16, 32>}, {transform_indices = @transform_6, window_bounds = array<i64: 16, 32>}]} {
    %c0_i32 = arith.constant 0 : i32
    %0 = arith.cmpi eq, %arg1, %c0_i32 : i32
    %1 = arith.extui %0 : i1 to i32
    %c0_i32_0 = arith.constant 0 : i32
    %2 = arith.cmpi ne, %1, %c0_i32_0 : i32
    scf.if %2 {
      %cst_24 = arith.constant 0.000000e+00 : f32
      %22 = vector.broadcast %cst_24 : f32 to vector<16x64xf32>
      %c0_25 = arith.constant 0 : index
      %c0_26 = arith.constant 0 : index
      %23 = vector.load %arg9[%c0_25, %c0_26] : memref<16x64xf32, #tpu.memory_space<vmem>>, vector<16x64xf32>
      tpu.vector_store %arg9[%c0_25, %c0_26], %22 {strides = array<i32>} : memref<16x64xf32, #tpu.memory_space<vmem>>, vector<16x64xf32>,
      %cst_27 = arith.constant 0.000000e+00 : f32
      %24 = vector.broadcast %cst_27 : f32 to vector<16x32xf32>
      %c0_28 = arith.constant 0 : index
      %c0_29 = arith.constant 0 : index
      %25 = vector.load %arg10[%c0_28, %c0_29] : memref<16x32xf32, #tpu.memory_space<vmem>>, vector<16x32xf32>
      tpu.vector_store %arg10[%c0_28, %c0_29], %24 {strides = array<i32>} : memref<16x32xf32, #tpu.memory_space<vmem>>, vector<16x32xf32>,
      %cst_30 = arith.constant 0.000000e+00 : f32
      %26 = vector.broadcast %cst_30 : f32 to vector<16x32xf32>
      %c0_31 = arith.constant 0 : index
      %c0_32 = arith.constant 0 : index
      %27 = vector.load %arg11[%c0_31, %c0_32] : memref<16x32xf32, #tpu.memory_space<vmem>>, vector<16x32xf32>
      tpu.vector_store %arg11[%c0_31, %c0_32], %26 {strides = array<i32>} : memref<16x32xf32, #tpu.memory_space<vmem>>, vector<16x32xf32>,
    } else {
    }
    %c0 = arith.constant 0 : index
    %c0_1 = arith.constant 0 : index
    %3 = vector.load %arg2[%c0, %c0_1] : memref<16x64xf32, #tpu.memory_space<vmem>>, vector<16x64xf32>
    %c0_2 = arith.constant 0 : index
    %c0_3 = arith.constant 0 : index
    %4 = vector.load %arg9[%c0_2, %c0_3] : memref<16x64xf32, #tpu.memory_space<vmem>>, vector<16x64xf32>
    %c0_4 = arith.constant 0 : index
    %c0_5 = arith.constant 0 : index
    %5 = vector.load %arg3[%c0_4, %c0_5] : memref<64x64xf32, #tpu.memory_space<vmem>>, vector<64x64xf32>
    %cst = arith.constant dense<0.000000e+00> : vector<16x64xf32>
    %6 = tpu.matmul %3, %5, %cst {dimension_numbers = #tpu.dot_dimension_numbers<[1], [1], [0], [0], [0, 0, 1, 0], [], []>} : vector<16x64xf32>, vector<64x64xf32>, vector<16x64xf32> -> vector<16x64xf32>
    %7 = arith.addf %4, %6 : vector<16x64xf32>
    %c0_6 = arith.constant 0 : index
    %c0_7 = arith.constant 0 : index
    %8 = vector.load %arg9[%c0_6, %c0_7] : memref<16x64xf32, #tpu.memory_space<vmem>>, vector<16x64xf32>
    tpu.vector_store %arg9[%c0_6, %c0_7], %7 {strides = array<i32>} : memref<16x64xf32, #tpu.memory_space<vmem>>, vector<16x64xf32>,
    %c0_8 = arith.constant 0 : index
    %c0_9 = arith.constant 0 : index
    %9 = vector.load %arg10[%c0_8, %c0_9] : memref<16x32xf32, #tpu.memory_space<vmem>>, vector<16x32xf32>
    %c0_10 = arith.constant 0 : index
    %c0_11 = arith.constant 0 : index
    %10 = vector.load %arg4[%c0_10, %c0_11] : memref<32x64xf32, #tpu.memory_space<vmem>>, vector<32x64xf32>
    %cst_12 = arith.constant dense<0.000000e+00> : vector<16x32xf32>
    %11 = tpu.matmul %3, %10, %cst_12 {dimension_numbers = #tpu.dot_dimension_numbers<[1], [1], [0], [0], [0, 0, 1, 0], [], []>} : vector<16x64xf32>, vector<32x64xf32>, vector<16x32xf32> -> vector<16x32xf32>
    %12 = arith.addf %9, %11 : vector<16x32xf32>
    %c0_13 = arith.constant 0 : index
    %c0_14 = arith.constant 0 : index
    %13 = vector.load %arg10[%c0_13, %c0_14] : memref<16x32xf32, #tpu.memory_space<vmem>>, vector<16x32xf32>
    tpu.vector_store %arg10[%c0_13, %c0_14], %12 {strides = array<i32>} : memref<16x32xf32, #tpu.memory_space<vmem>>, vector<16x32xf32>,
    %c0_15 = arith.constant 0 : index
    %c0_16 = arith.constant 0 : index
    %14 = vector.load %arg11[%c0_15, %c0_16] : memref<16x32xf32, #tpu.memory_space<vmem>>, vector<16x32xf32>
    %c0_17 = arith.constant 0 : index
    %c0_18 = arith.constant 0 : index
    %15 = vector.load %arg5[%c0_17, %c0_18] : memref<32x64xf32, #tpu.memory_space<vmem>>, vector<32x64xf32>
    %cst_19 = arith.constant dense<0.000000e+00> : vector<16x32xf32>
    %16 = tpu.matmul %3, %15, %cst_19 {dimension_numbers = #tpu.dot_dimension_numbers<[1], [1], [0], [0], [0, 0, 1, 0], [], []>} : vector<16x64xf32>, vector<32x64xf32>, vector<16x32xf32> -> vector<16x32xf32>
    %17 = arith.addf %14, %16 : vector<16x32xf32>
    %c0_20 = arith.constant 0 : index
    %c0_21 = arith.constant 0 : index
    %18 = vector.load %arg11[%c0_20, %c0_21] : memref<16x32xf32, #tpu.memory_space<vmem>>, vector<16x32xf32>
    tpu.vector_store %arg11[%c0_20, %c0_21], %17 {strides = array<i32>} : memref<16x32xf32, #tpu.memory_space<vmem>>, vector<16x32xf32>,
    %c0_i32_22 = arith.constant 0 : i32
    %19 = arith.cmpi eq, %arg1, %c0_i32_22 : i32
    %20 = arith.extui %19 : i1 to i32
    %c0_i32_23 = arith.constant 0 : i32
    %21 = arith.cmpi ne, %20, %c0_i32_23 : i32
    scf.if %21 {
      %c0_24 = arith.constant 0 : index
      %c0_25 = arith.constant 0 : index
      %22 = vector.load %arg9[%c0_24, %c0_25] : memref<16x64xf32, #tpu.memory_space<vmem>>, vector<16x64xf32>
      %c0_26 = arith.constant 0 : index
      %c0_27 = arith.constant 0 : index
      %23 = vector.load %arg6[%c0_26, %c0_27] : memref<16x64xf32, #tpu.memory_space<vmem>>, vector<16x64xf32>
      tpu.vector_store %arg6[%c0_26, %c0_27], %22 {strides = array<i32>} : memref<16x64xf32, #tpu.memory_space<vmem>>, vector<16x64xf32>,
      %c0_28 = arith.constant 0 : index
      %c0_29 = arith.constant 0 : index
      %24 = vector.load %arg10[%c0_28, %c0_29] : memref<16x32xf32, #tpu.memory_space<vmem>>, vector<16x32xf32>
      %c0_30 = arith.constant 0 : index
      %c0_31 = arith.constant 0 : index
      %25 = vector.load %arg7[%c0_30, %c0_31] : memref<16x32xf32, #tpu.memory_space<vmem>>, vector<16x32xf32>
      tpu.vector_store %arg7[%c0_30, %c0_31], %24 {strides = array<i32>} : memref<16x32xf32, #tpu.memory_space<vmem>>, vector<16x32xf32>,
      %c0_32 = arith.constant 0 : index
      %c0_33 = arith.constant 0 : index
      %26 = vector.load %arg11[%c0_32, %c0_33] : memref<16x32xf32, #tpu.memory_space<vmem>>, vector<16x32xf32>
      %c0_34 = arith.constant 0 : index
      %c0_35 = arith.constant 0 : index
      %27 = vector.load %arg8[%c0_34, %c0_35] : memref<16x32xf32, #tpu.memory_space<vmem>>, vector<16x32xf32>
      tpu.vector_store %arg8[%c0_34, %c0_35], %26 {strides = array<i32>} : memref<16x32xf32, #tpu.memory_space<vmem>>, vector<16x32xf32>,
    } else {
    }
    return
  }
  func.func @transform_0(%arg0: i32, %arg1: i32) -> (i32, i32) {
    %c0_i32 = arith.constant 0 : i32
    return %arg0, %arg1 : i32, i32
  }
  func.func @transform_1(%arg0: i32, %arg1: i32) -> (i32, i32) {
    %c0_i32 = arith.constant 0 : i32
    %c0_i32_0 = arith.constant 0 : i32
    return %c0_i32, %arg1 : i32, i32
  }
  func.func @transform_2(%arg0: i32, %arg1: i32) -> (i32, i32) {
    %c0_i32 = arith.constant 0 : i32
    %c0_i32_0 = arith.constant 0 : i32
    return %c0_i32, %arg1 : i32, i32
  }
  func.func @transform_3(%arg0: i32, %arg1: i32) -> (i32, i32) {
    %c0_i32 = arith.constant 0 : i32
    %c0_i32_0 = arith.constant 0 : i32
    return %c0_i32, %arg1 : i32, i32
  }
  func.func @transform_4(%arg0: i32, %arg1: i32) -> (i32, i32) {
    %c0_i32 = arith.constant 0 : i32
    %c0_i32_0 = arith.constant 0 : i32
    return %arg0, %c0_i32 : i32, i32
  }
  func.func @transform_5(%arg0: i32, %arg1: i32) -> (i32, i32) {
    %c0_i32 = arith.constant 0 : i32
    %c0_i32_0 = arith.constant 0 : i32
    return %arg0, %c0_i32 : i32, i32
  }
  func.func @transform_6(%arg0: i32, %arg1: i32) -> (i32, i32) {
    %c0_i32 = arith.constant 0 : i32
    %c0_i32_0 = arith.constant 0 : i32
    return %arg0, %c0_i32 : i32, i32
  }
}

</mosaic_0001>

<bundles_post_ra>
// kernel: tpu_custom_call.1
= control target key start
LH: loop header
LB: loop body
LE: loop exit
PB: predicated region body
PF: predicated region fallthrough
CT: control target
= control target key end

     0   :  { %12 = vsyncpa [#allocation6], 0  ;;  %s1011_s0 = inlined_call_operand.hbm [shape: f32[16,64], index: 0, kind: input, shape index: {}]   ;;  %s1012_s1 = inlined_call_operand.hbm [shape: f32[64,64], index: 1, kind: input, shape index: {}]   ;;  %s1013_s2 = inlined_call_operand.hbm [shape: f32[32,64], index: 2, kind: input, shape index: {}]   ;;  %s1014_s3 = inlined_call_operand.hbm [shape: f32[32,64], index: 3, kind: input, shape index: {}]   ;;  %s1015_s4 = inlined_call_operand.hbm [shape: f32[16,64], index: 4, kind: output, shape index: {0}]   ;;  %s1016_s5 = inlined_call_operand.hbm [shape: f32[16,32], index: 5, kind: output, shape index: {1}]   ;;  %s1017_s6 = inlined_call_operand.hbm [shape: f32[16,32], index: 6, kind: output, shape index: {2}]  }
   0x1   :  { %13 = vsyncpa [#allocation9], 0 }
   0x2   :  { %14 = vsyncpa [#allocation12], 0 }
   0x3   :  { %15 = vsyncpa [#allocation7], 0 }
   0x4   :  { %16 = vsyncpa [#allocation15], 0  ;;  %s778_s21 = smov [#allocation8]   ;;  %s779_s23 = smov [#allocation5]  }
   0x5   :  { %s34_s22 = sshll.u32 %s778_s21, 4  ;;  %s22_s24 = sshll.u32 %s779_s23, 4  ;;  %s35_s22 = int_to_ptr.vmem [resolvable:$true] %s34_s22  ;;  %s823_s24 = int_to_ptr.vmem [resolvable:$true] %s22_s24 }
   0x6   :  { %s614_s27 = scalar_lea.hbm %s1012_s1, 1024 }
   0x7   :  { %p615_p0 = scmp.ne.s32.totalorder %s1012_s1, %s614_s27  ;;  %p618_p1 = scmp.lt.u32.totalorder %s614_s27, %s1012_s1 }
   0x9   :  { %p620_p2 = pnand %p618_p1, %p615_p0 }
   0xb   :  { %623 = shalt.err (!%p620_p2)
}
   0xc   :  { %s624_s8 = scalar_lea.vmem %s35_s22, 1024  ;;  %p629_p4 = scmp.lt.s32.totalorder %s35_s22, %s35_s22 }
   0xd   :  { %p625_p3 = scmp.ne.s32.totalorder %s35_s22, %s624_s8  ;;  %p630_p5 = scmp.lt.s32.totalorder %s624_s8, %s624_s8 }
   0xf   :  { %p631_p6 = por %p630_p5, %p629_p4 }
  0x11   :  { %p632_p7 = pnand %p631_p6, %p625_p3 }
  0x13   :  { %635 = shalt.err (!%p632_p7)
}
  0x14   :  { %s780_s9 = smov 128   ;;  %s781_s10 = smov 8  }
  0x15   :  { %40 = dma.hbm_to_vmem [thread:$0]  %s1012_s1, 1024, %s35_s22, [#allocation9], %s780_s9, %s780_s9, %s781_s10  }
  0x16   :  { %s636_s15 = scalar_lea.hbm %s1011_s0, 256 }
  0x17   :  { %p637_p8 = scmp.ne.s32.totalorder %s1011_s0, %s636_s15  ;;  %p640_p9 = scmp.lt.u32.totalorder %s636_s15, %s1011_s0 }
  0x19   :  { %p642_p10 = pnand %p640_p9, %p637_p8 }
  0x1b   :  { %645 = shalt.err (!%p642_p10)
}
  0x1c   :  { %s646_s20 = scalar_lea.vmem %s823_s24, 256  ;;  %p651_p12 = scmp.lt.s32.totalorder %s823_s24, %s823_s24 }
  0x1d   :  { %p647_p11 = scmp.ne.s32.totalorder %s823_s24, %s646_s20  ;;  %p652_p13 = scmp.lt.s32.totalorder %s646_s20, %s646_s20 }
  0x1f   :  { %p653_p0 = por %p652_p13, %p651_p12 }
  0x21   :  { %p654_p1 = pnand %p653_p0, %p647_p11 }
  0x23   :  { %657 = shalt.err (!%p654_p1)
}
  0x24   :  { %28 = dma.hbm_to_vmem [thread:$0]  %s1011_s0, 256, %s823_s24, [#allocation6], %s780_s9, %s780_s9, %s781_s10  }
  0x25   :  { %s782_s22 = smov [#allocation10]   ;;  %s783_s25 = smov [#allocation11]  }
  0x26   :  { %s46_s23 = sshll.u32 %s782_s22, 4  ;;  %s58_s26 = sshll.u32 %s783_s25, 4  ;;  %s47_s23 = int_to_ptr.vmem [resolvable:$true] %s46_s23  ;;  %s860_s26 = int_to_ptr.vmem [resolvable:$true] %s58_s26 }
  0x27   :  { %s658_s29 = scalar_lea.hbm %s1013_s2, 512 }
  0x28   :  { %p659_p2 = scmp.ne.s32.totalorder %s1013_s2, %s658_s29  ;;  %p662_p3 = scmp.lt.u32.totalorder %s658_s29, %s1013_s2 }
  0x2a   :  { %p664_p4 = pnand %p662_p3, %p659_p2 }
  0x2c   :  { %667 = shalt.err (!%p664_p4)
}
  0x2d   :  { %s668_s0 = scalar_lea.vmem %s47_s23, 512  ;;  %p673_p6 = scmp.lt.s32.totalorder %s47_s23, %s47_s23 }
  0x2e   :  { %p669_p5 = scmp.ne.s32.totalorder %s47_s23, %s668_s0  ;;  %p674_p7 = scmp.lt.s32.totalorder %s668_s0, %s668_s0 }
  0x30   :  { %p675_p8 = por %p674_p7, %p673_p6 }
  0x32   :  { %p676_p9 = pnand %p675_p8, %p669_p5 }
  0x34   :  { %679 = shalt.err (!%p676_p9)
}
  0x35   :  { %52 = dma.hbm_to_vmem [thread:$0]  %s1013_s2, 512, %s47_s23, [#allocation9], %s780_s9, %s780_s9, %s781_s10  }
  0x36   :  { %s680_s15 = scalar_lea.hbm %s1014_s3, 512 }
  0x37   :  { %p681_p10 = scmp.ne.s32.totalorder %s1014_s3, %s680_s15  ;;  %p684_p11 = scmp.lt.u32.totalorder %s680_s15, %s1014_s3 }
  0x39   :  { %p686_p12 = pnand %p684_p11, %p681_p10 }
  0x3b   :  { %689 = shalt.err (!%p686_p12)
}
  0x3c   :  { %s690_s20 = scalar_lea.vmem %s860_s26, 512  ;;  %p695_p0 = scmp.lt.s32.totalorder %s860_s26, %s860_s26 }
  0x3d   :  { %p691_p13 = scmp.ne.s32.totalorder %s860_s26, %s690_s20  ;;  %p696_p1 = scmp.lt.s32.totalorder %s690_s20, %s690_s20 }
  0x3f   :  { %p697_p2 = por %p696_p1, %p695_p0 }
  0x41   :  { %p698_p3 = pnand %p697_p2, %p691_p13 }
  0x43   :  { %701 = shalt.err (!%p698_p3)
}
  0x44   :  { %64 = dma.hbm_to_vmem [thread:$0]  %s1014_s3, 512, %s860_s26, [#allocation12], %s780_s9, %s780_s9, %s781_s10  }
  0x45   :  { %768 = dma.done.wait [#allocation6], 256  }
  0x46   :  { %769 = vsyncadd [#allocation6], 4294967040 }
  0x47   :  { %770 = dma.done.wait [#allocation9], 1536  }
  0x48   :  { %771 = vsyncadd [#allocation9], 4294965760 }
  0x49   :  { %772 = dma.done.wait [#allocation12], 512  }
  0x4a   :  { %773 = vsyncadd [#allocation12], 4294966784  ;;  %vm81_vm0 = vcmask 523264   ;;  %vm84_vm1 = vcmask 261120   ;;  %v784_v0 = vmov 0.0   ;;  %v93_v2 = vld [vmem:[#allocation8] sm:$0xff] }
  0x4b   :  { %86 = vst.msk [vmem:[#allocation3 + $0x8] sm:$0xff] %vm84_vm1, %v784_v0  ;;  %85 = vst.msk [vmem:[#allocation3] sm:$0xff] %vm84_vm1, %v784_v0  ;;  %v94_v3 = vld [vmem:[#allocation8 + $0x8] sm:$0xff]  ;;  %v213_v4 = vld [vmem:[#allocation10] sm:$0xff]  ;;  %s785_s3 = smov [#allocation14]  }
  0x4c   :  { %82 = vst.msk [vmem:[#allocation2] sm:$0xff] %vm81_vm0, %v784_v0  ;;  %83 = vst.msk [vmem:[#allocation2 + $0x8] sm:$0xff] %vm81_vm0, %v784_v0  ;;  %v556_v5 = vpack.c.bf16 %v94_v3, %v93_v2  ;;  %v214_v6 = vld [vmem:[#allocation10 + $0x8] sm:$0xff]  ;;  %v95_v7 = vld [vmem:[#allocation8 + $0x10] sm:$0xff]  ;;  %s438_s21 = sshll.u32 %s785_s3, 4  ;;  %s439_s21 = int_to_ptr.vmem [resolvable:$true] %s438_s21 }
  0x4d   :  { %87 = vst.msk [vmem:[#allocation4] sm:$0xff] %vm84_vm1, %v784_v0  ;;  %88 = vst.msk [vmem:[#allocation4 + $0x8] sm:$0xff] %vm84_vm1, %v784_v0  ;;  %v96_v8 = vld [vmem:[#allocation8 + $0x18] sm:$0xff]  ;;  %v580_v9 = vpack.c.bf16 %v214_v6, %v213_v4  ;;  %v215_v11 = vld [vmem:[#allocation10 + $0x10] sm:$0xff]  ;;  %s702_s22 = scalar_lea.vmem %s439_s21, 256  ;;  %p707_p5 = scmp.lt.s32.totalorder %s439_s21, %s439_s21 }
  0x4e   :  { %vm905_vm2 = vmpackc.low %vm81_vm0, %vm81_vm0  ;;  %v562_v10 = vpack.c.bf16 %v96_v8, %v95_v7  ;;  %v216_v12 = vld [vmem:[#allocation10 + $0x18] sm:$0xff]  ;;  %v89_v13 = vld [vmem:[#allocation5] sm:$0xff]  ;;  %p703_p4 = scmp.ne.s32.totalorder %s439_s21, %s702_s22  ;;  %p708_p6 = scmp.lt.s32.totalorder %s702_s22, %s702_s22 }
  0x4f   :  { %558 = vmatprep.subr.msk.bf16.mxu0 %vm905_vm2, %v556_v5  ;;  %v586_v14 = vpack.c.bf16 %v216_v12, %v215_v11  ;;  %542 = vmatprep.mubr.msk.f32.mxu1 %vm81_vm0, %v89_v13  ;;  %v97_v15 = vld [vmem:[#allocation8 + $0x20] sm:$0xff]  ;;  %v98_v16 = vld [vmem:[#allocation8 + $0x28] sm:$0xff]  ;;  %v99_v21 = vld [vmem:[#allocation8 + $0x30] sm:$0xff] }
  0x50   :  { %582 = vmatprep.subr.msk.bf16.mxu1 %vm905_vm2, %v580_v9  ;;  %561 = vmatpush3.bf16.xpose.msk.msra.mxu0 %vm905_vm2, %v556_v5  ;;  %v311_v17 = vld [vmem:[#allocation11] sm:$0xff]  ;;  %v312_v18 = vld [vmem:[#allocation11 + $0x8] sm:$0xff]  ;;  %v568_v19 = vpack.c.bf16 %v98_v16, %v97_v15  ;;  %v100_v22 = vld [vmem:[#allocation8 + $0x38] sm:$0xff]  ;;  %p709_p7 = por %p708_p6, %p707_p5 }
  0x51   :  { %585 = vmatpush3.bf16.xpose.msk.msra.mxu1 %vm905_vm2, %v580_v9  ;;  %564 = vmatprep.subr.msk.bf16.mxu0 %vm905_vm2, %v562_v10  ;;  %v592_v20 = vpack.c.bf16 %v312_v18, %v311_v17  ;;  %v313_v23 = vld [vmem:[#allocation11 + $0x10] sm:$0xff]  ;;  %v314_v24 = vld [vmem:[#allocation11 + $0x18] sm:$0xff]  ;;  %v574_v26 = vpack.c.bf16 %v100_v22, %v99_v21 }
  0x52   :  { %588 = vmatprep.subr.msk.bf16.mxu1 %vm905_vm2, %v586_v14  ;;  %531 = vmatprep.mubr.msk.f32.mxu0 %vm81_vm0, %v89_v13  ;;  %v90_v25 = vld [vmem:[#allocation5 + $0x8] sm:$0xff]  ;;  %v598_v27 = vpack.c.bf16 %v314_v24, %v313_v23  ;;  %v211_v29 = vld [vmem:[#allocation3] sm:$0xff]  ;;  %p710_p8 = pnand %p709_p7, %p703_p4 }
  0x53   :  { %v212_v28 = vld [vmem:[#allocation3 + $0x8] sm:$0xff]  ;;  %v92_v36 = vld [vmem:[#allocation2 + $0x8] sm:$0xff] }
  0x58   :  { %567 = vmatpush3.bf16.xpose.msk.msra.mxu0 %vm905_vm2, %v562_v10 }
  0x59   :  { %591 = vmatpush3.bf16.xpose.msk.msra.mxu1 %vm905_vm2, %v586_v14  ;;  %570 = vmatprep.subr.msk.bf16.mxu0 %vm905_vm2, %v568_v19 }
  0x5a   :  { %594 = vmatprep.subr.msk.bf16.mxu1 %vm905_vm2, %v592_v20 }
  0x60   :  { %543 = vmatmul.mubr.msk.f32.vlgmr.msra.gmra.mrb[0].mxu1 %vm81_vm0, %v90_v25  ;;  %573 = vmatpush3.bf16.xpose.msk.msra.mxu0 %vm905_vm2, %v568_v19 }
  0x61   :  { %597 = vmatpush3.bf16.xpose.msk.msra.mxu1 %vm905_vm2, %v592_v20  ;;  %576 = vmatprep.subr.msk.bf16.mxu0 %vm905_vm2, %v574_v26 }
  0x62   :  { %600 = vmatprep.subr.msk.bf16.mxu1 %vm905_vm2, %v598_v27  ;;  %553 = vmatprep.mubr.msk.f32.mxu1 %vm81_vm0, %v89_v13 }
  0x68   :  { %579 = vmatpush3.bf16.xpose.msk.msra.mxu0 %vm905_vm2, %v574_v26 }
  0x69   :  { %603 = vmatpush3.bf16.xpose.msk.msra.mxu1 %vm905_vm2, %v598_v27 }
  0x6f   :  { %532 = vmatmul.mubr.msk.f32.vlgmr.msra.gmra.mrb[0].mxu0 %vm81_vm0, %v90_v25 }
  0x70   :  { %554 = vmatmul.mubr.msk.f32.vlgmr.msra.gmra.mrb[2].mxu1 %vm81_vm0, %v90_v25 }
 0x133   :  { %v544_v30 = vpop.f32.mrb[0].mxu1 }
 0x134   :  { %v305_v31 = vadd.f32 %v544_v30, %v212_v28  ;;  %v295_v32 = vpop.f32.mrb[1].mxu1 }
 0x135   :  { %v304_v33 = vadd.f32 %v295_v32, %v211_v29 }
 0x136   :  { %308 = vst.msk [vmem:[#allocation3 + $0x8] sm:$0xff] %vm84_vm1, %v305_v31 }
 0x137   :  { %307 = vst.msk [vmem:[#allocation3] sm:$0xff] %vm84_vm1, %v304_v33 }
 0x13d   :  { %v414_v34 = vld [vmem:[#allocation3 + $0x8] sm:$0xff] }
 0x13e   :  { %v413_v35 = vld [vmem:[#allocation3] sm:$0xff]  ;;  %416 = vst.msk [vmem:[#allocation14 + $0x8] sm:$0xff] %vm84_vm1, %v414_v34 }
 0x13f   :  { %415 = vst.msk [vmem:[#allocation14] sm:$0xff] %vm84_vm1, %v413_v35 }
 0x140   :  { %713 = shalt.err (!%p710_p8)
}
 0x141   :  { %s714_s26 = scalar_lea.hbm %s1016_s5, 256 }
 0x142   :  { %p715_p9 = scmp.ne.s32.totalorder %s1016_s5, %s714_s26  ;;  %p718_p10 = scmp.lt.u32.totalorder %s714_s26, %s1016_s5 }
 0x144   :  { %p720_p11 = pnand %p718_p10, %p715_p9 }
 0x146   :  { %723 = shalt.err (!%p720_p11)
}
 0x147   :  { %444 = dma.vmem_to_hbm [thread:$0]  %s439_s21, 256, %s1016_s5, [#allocation15], %s780_s9, %s780_s9, %s781_s10   ;;  %v310_v37 = vld [vmem:[#allocation4 + $0x8] sm:$0xff]  ;;  %v91_v38 = vld [vmem:[#allocation2] sm:$0xff]  ;;  %v533_v39 = vpop.f32.mrb[0].mxu0  ;;  %v555_v42 = vpop.f32.mrb[2].mxu1 }
 0x148   :  { %v309_v40 = vld [vmem:[#allocation4] sm:$0xff]  ;;  %v208_v41 = vadd.f32 %v533_v39, %v92_v36  ;;  %v198_v43 = vpop.f32.mrb[1].mxu0  ;;  %v403_v44 = vadd.f32 %v555_v42, %v310_v37  ;;  %v393_v46 = vpop.f32.mrb[3].mxu1  ;;  %s786_s5 = smov [#allocation13]   ;;  %s787_s0 = smov [#allocation16]  }
 0x149   :  { %v207_v45 = vadd.f32 %v198_v43, %v91_v38  ;;  %v402_v47 = vadd.f32 %v393_v46, %v309_v40  ;;  %s426_s11 = sshll.u32 %s786_s5, 4  ;;  %s450_s24 = sshll.u32 %s787_s0, 4  ;;  %s427_s11 = int_to_ptr.vmem [resolvable:$true] %s426_s11  ;;  %s971_s24 = int_to_ptr.vmem [resolvable:$true] %s450_s24 }
 0x14a   :  { %210 = vst.msk [vmem:[#allocation2 + $0x8] sm:$0xff] %vm81_vm0, %v208_v41  ;;  %s724_s12 = scalar_lea.vmem %s427_s11, 256  ;;  %p729_p13 = scmp.lt.s32.totalorder %s427_s11, %s427_s11 }
 0x14b   :  { %405 = vst.msk [vmem:[#allocation4 + $0x8] sm:$0xff] %vm84_vm1, %v403_v44  ;;  %404 = vst.msk [vmem:[#allocation4] sm:$0xff] %vm84_vm1, %v402_v47  ;;  %p725_p12 = scmp.ne.s32.totalorder %s427_s11, %s724_s12  ;;  %p730_p0 = scmp.lt.s32.totalorder %s724_s12, %s724_s12 }
 0x14c   :  { %209 = vst.msk [vmem:[#allocation2] sm:$0xff] %vm81_vm0, %v207_v45 }
 0x14d   :  { %p731_p1 = por %p730_p0, %p729_p13 }
 0x14f   :  { %p732_p2 = pnand %p731_p1, %p725_p12 }
 0x151   :  { %v410_v48 = vld [vmem:[#allocation2 + $0x8] sm:$0xff] }
 0x152   :  { %412 = vst.msk [vmem:[#allocation13 + $0x8] sm:$0xff] %vm81_vm0, %v410_v48  ;;  %v418_v50 = vld [vmem:[#allocation4 + $0x8] sm:$0xff]  ;;  %v417_v51 = vld [vmem:[#allocation4] sm:$0xff] }
 0x153   :  { %v409_v49 = vld [vmem:[#allocation2] sm:$0xff]  ;;  %420 = vst.msk [vmem:[#allocation16 + $0x8] sm:$0xff] %vm84_vm1, %v418_v50 }
 0x154   :  { %411 = vst.msk [vmem:[#allocation13] sm:$0xff] %vm81_vm0, %v409_v49 }
 0x155   :  { %735 = shalt.err (!%p732_p2)
}
 0x156   :  { %s736_s15 = scalar_lea.hbm %s1015_s4, 256 }
 0x157   :  { %p737_p3 = scmp.ne.s32.totalorder %s1015_s4, %s736_s15  ;;  %p740_p4 = scmp.lt.u32.totalorder %s736_s15, %s1015_s4 }
 0x159   :  { %p742_p5 = pnand %p740_p4, %p737_p3 }
 0x15b   :  { %745 = shalt.err (!%p742_p5)
}
 0x15c   :  { %432 = dma.vmem_to_hbm [thread:$0]  %s427_s11, 256, %s1015_s4, [#allocation7], %s780_s9, %s780_s9, %s781_s10   ;;  %419 = vst.msk [vmem:[#allocation16] sm:$0xff] %vm84_vm1, %v417_v51 }
 0x15d   :  { %s746_s1 = scalar_lea.vmem %s971_s24, 256  ;;  %p751_p7 = scmp.lt.s32.totalorder %s971_s24, %s971_s24 }
 0x15e   :  { %p747_p6 = scmp.ne.s32.totalorder %s971_s24, %s746_s1  ;;  %p752_p8 = scmp.lt.s32.totalorder %s746_s1, %s746_s1 }
 0x160   :  { %p753_p9 = por %p752_p8, %p751_p7 }
 0x162   :  { %p754_p10 = pnand %p753_p9, %p747_p6 }
 0x164   :  { %757 = shalt.err (!%p754_p10)
}
 0x165   :  { %s758_s22 = scalar_lea.hbm %s1017_s6, 256 }
 0x166   :  { %p759_p11 = scmp.ne.s32.totalorder %s1017_s6, %s758_s22  ;;  %p762_p12 = scmp.lt.u32.totalorder %s758_s22, %s1017_s6 }
 0x168   :  { %p764_p13 = pnand %p762_p12, %p759_p11 }
 0x16a   :  { %767 = shalt.err (!%p764_p13)
}
 0x16b   :  { %456 = dma.vmem_to_hbm [thread:$0]  %s971_s24, 256, %s1017_s6, [#allocation15], %s780_s9, %s780_s9, %s781_s10  }
 0x16c   :  { %774 = dma.done.wait [#allocation7], 256  }
 0x16d   :  { %775 = vsyncadd [#allocation7], 4294967040 }
 0x16e   :  { %776 = dma.done.wait [#allocation15], 512  }
 0x16f   :  { %777 = vsyncadd [#allocation15], 4294966784 }
 0x170   :  { %466 = vsyncpa [#allocation6], 1 }
 0x171   :  { %467 = vsyncpa [#allocation9], 1 }
 0x172   :  { %468 = vsyncpa [#allocation12], 1 }
 0x173   :  { %469 = vsyncpa [#allocation7], 1 }
 0x174   :  { %470 = vsyncpa [#allocation15], 1 }

</bundles_post_ra>
